<compile_context>
chip_gen: v7x
topology: tpu7x:2x2x1
jax: 0.10.0
libtpu: 0.0.40
codegen_flags: <defaults>
</compile_context>

<pallas_src>
import functools
import math

import jax
import jax.numpy as jnp
from jax import lax
from jax.experimental import pallas as pl
from jax.experimental.pallas import tpu as pltpu


def _round_up(n, m):
    return ((n + m - 1) // m) * m


# --------------------------------------------------------------------------
# Kernels
# --------------------------------------------------------------------------
def _mh_rmsnorm_rowwise_kernel(x_ref, g_ref, o_ref, *, eps):
    # x_ref: (TR, D) tile, one (token, head) vector per row.
    # g_ref: (TR, D) f32 constant block: row r holds gamma[r % H] * sqrt(D).
    x = x_ref[...].astype(jnp.float32)
    ss = jnp.sum(x * x, axis=-1, keepdims=True)              # (TR, 1)  XLU
    inv = lax.rsqrt(jnp.maximum(ss, eps * eps))               # EUP slot
    o_ref[...] = (x * inv * g_ref[...]).astype(o_ref.dtype)   # lane-dense vst


def _mh_rmsnorm_mxu_kernel(x_ref, s_ref, e_ref, o_ref, *, eps):
    # x_ref: (TN, H*D) lane-dense token tile.
    # s_ref: (HD, Hp) block-diagonal ones  -> segmented per-head sum on MXU.
    # e_ref: (Hp, HD) one-hot expansion pre-multiplied by gamma * sqrt(D).
    x = x_ref[...].astype(jnp.float32)
    ss = jnp.dot(x * x, s_ref[...], preferred_element_type=jnp.float32)    # (TN, Hp)
    inv = lax.rsqrt(jnp.maximum(ss, eps * eps))                            # (TN, Hp)
    scale = jnp.dot(inv, e_ref[...], preferred_element_type=jnp.float32)   # (TN, HD)
    o_ref[...] = (x * scale).astype(o_ref.dtype)                           # lane-dense vst


# --------------------------------------------------------------------------
# Tile sizing
# --------------------------------------------------------------------------
def _vmem_budget():
    try:
        vmem_cap = int(pltpu.get_tpu_info().vmem_capacity_bytes)
    except Exception:  # pragma: no cover - conservative fallback
        vmem_cap = 64 * 1024 * 1024
    # Leave headroom: ~48 MiB on v7x (64 MiB phys), ~96 MiB on v5e/v6e (128 MiB).
    vmem_limit = min(max(vmem_cap - 16 * 1024 * 1024, 32 * 1024 * 1024),
                     96 * 1024 * 1024)
    # Block-size-dependent allocations (double-buffered I/O + f32 temps) get
    # roughly half of that; the rest is slack for the compiler.
    return vmem_limit, vmem_limit // 2


def _pick_tile(rows, per_row_bytes, align, budget):
    tile = budget // max(per_row_bytes, 1)
    tile = max(align, (tile // align) * align)
    # Keep >= 2 grid steps whenever rows allow, so both v7x TCs are busy
    # (no-op on single-TC v5e/v6e).
    if rows > align:
        tile = min(tile, _round_up(-(-rows // 2), align))
    return min(tile, _round_up(rows, align))


# --------------------------------------------------------------------------
# Wrapper
# --------------------------------------------------------------------------
def multi_head_rms_norm(x, gamma, *, eps=1e-12):
    """x: [B, L, H, D] (any float dtype), gamma: [H, D]."""
    B, L, H, D = x.shape
    assert gamma.shape == (H, D)
    HD = H * D
    N = B * L
    itemsize = jnp.dtype(x.dtype).itemsize
    vmem_limit, budget = _vmem_budget()

    # Fold sqrt(D) and the f32 cast into gamma once (it is tiny).
    g_scaled = gamma.astype(jnp.float32) * (float(D) ** 0.5)

    compiler_params = pltpu.CompilerParams(
        dimension_semantics=("parallel",),
        vmem_limit_bytes=vmem_limit,
    )

    if D % 128 == 0:
        # ----- row-wise path: exact per-row reduce, no masking/matmul -----
        rows = N * H
        align = (8 * H) // math.gcd(8, H)            # lcm(8, H)
        per_row = D * (4 * itemsize + 5 * 4)          # dbuf in/out + f32 temps
        tile = _pick_tile(rows, per_row, align, budget)

        x_rows = x.reshape(rows, D)
        g_tiled = jnp.tile(g_scaled, (tile // H, 1))  # (tile, D), row r -> gamma[r % H]

        out_rows = pl.pallas_call(
            functools.partial(_mh_rmsnorm_rowwise_kernel, eps=eps),
            out_shape=jax.ShapeDtypeStruct((rows, D), x.dtype),
            grid_spec=pltpu.PrefetchScalarGridSpec(
                num_scalar_prefetch=0,
                grid=(pl.cdiv(rows, tile),),          # ragged last block masked
                in_specs=[
                    pl.BlockSpec((tile, D), lambda i: (i, 0)),
                    pl.BlockSpec((tile, D), lambda i: (0, 0)),
                ],
                out_specs=pl.BlockSpec((tile, D), lambda i: (i, 0)),
            ),
            compiler_params=compiler_params,
        )(x_rows, g_tiled)
        return out_rows.reshape(B, L, H, D)

    # ----- lane-dense path: segmented per-head reduce on the MXU -----
    Hp = _round_up(H, 128)
    per_row = HD * (4 * itemsize + 5 * 4) + 8 * Hp
    tile = _pick_tile(N, per_row, 8, budget)

    x_flat = x.reshape(N, HD)
    head_of_lane = jnp.arange(HD, dtype=jnp.int32) // D          # (HD,)
    hid = jnp.arange(Hp, dtype=jnp.int32)                        # (Hp,)
    # S[j, h] = 1 iff lane j belongs to head h  ->  dot(x*x, S) = per-head sum_sq.
    S = (head_of_lane[:, None] == hid[None, :]).astype(jnp.float32)        # (HD, Hp)
    # E[h, j] = gamma[h, j%D]*sqrt(D) iff lane j belongs to head h, else 0.
    # Padded rows (h >= H) are zero, so garbage rsqrt(0) lanes contribute nothing.
    E = jnp.where(head_of_lane[None, :] == hid[:, None],
                  g_scaled.reshape(1, HD), 0.0).astype(jnp.float32)        # (Hp, HD)

    out_flat = pl.pallas_call(
        functools.partial(_mh_rmsnorm_mxu_kernel, eps=eps),
        out_shape=jax.ShapeDtypeStruct((N, HD), x.dtype),
        grid_spec=pltpu.PrefetchScalarGridSpec(
            num_scalar_prefetch=0,
            grid=(pl.cdiv(N, tile),),                 # ragged last block masked
            in_specs=[
                pl.BlockSpec((tile, HD), lambda i: (i, 0)),
                pl.BlockSpec((HD, Hp), lambda i: (0, 0)),
                pl.BlockSpec((Hp, HD), lambda i: (0, 0)),
            ],
            out_specs=pl.BlockSpec((tile, HD), lambda i: (i, 0)),
        ),
        compiler_params=compiler_params,
    )(x_flat, S, E)
    return out_flat.reshape(B, L, H, D)


# --------------------------------------------------------------------------
# Reference + test
# --------------------------------------------------------------------------
def _reference(x, gamma):
    xf = x.astype(jnp.float32)
    D = x.shape[-1]
    norm = jnp.sqrt(jnp.sum(xf * xf, axis=-1, keepdims=True))
    y = xf / jnp.maximum(norm, 1e-12) * gamma * (float(D) ** 0.5)
    return y.astype(x.dtype)


def _check(x, gamma):
    out = jax.block_until_ready(multi_head_rms_norm(x, gamma))
    ref = _reference(x, gamma)
    assert out.shape == x.shape
    assert out.dtype == x.dtype
    assert jnp.allclose(out.astype(jnp.float32), ref.astype(jnp.float32),
                        atol=1e-2, rtol=2e-2)


if __name__ == "__main__":
    key = jax.random.PRNGKey(0)
    kx1, kg1, kx2, kg2 = jax.random.split(key, 4)

    # MXU (lane-dense) path: D % 128 != 0.
    B, L, H, D = 2, 8, 4, 32
    x1 = jax.random.normal(kx1, (B, L, H, D), dtype=jnp.float32).astype(jnp.bfloat16)
    g1 = jnp.ones((H, D), jnp.float32) + 0.01 * jax.random.normal(kg1, (H, D), jnp.float32)
    _check(x1, g1)

    # Row-wise path: D % 128 == 0.
    B2, L2, H2, D2 = 2, 4, 2, 128
    x2 = jax.random.normal(kx2, (B2, L2, H2, D2), dtype=jnp.float32).astype(jnp.bfloat16)
    g2 = jnp.ones((H2, D2), jnp.float32) + 0.01 * jax.random.normal(kg2, (H2, D2), jnp.float32)
    _check(x2, g2)

    print("KERNEL_OK")
</pallas_src>

<mosaic_0001>
module attributes {stable_mosaic.version = 11 : i64} {
  func.func @_mh_rmsnorm_mxu_kernel(%arg0: i32, %arg1: memref<8x128xbf16, #tpu.memory_space<vmem>>, %arg2: memref<128x128xf32, #tpu.memory_space<vmem>>, %arg3: memref<128x128xf32, #tpu.memory_space<vmem>>, %arg4: memref<8x128xbf16, #tpu.memory_space<vmem>>) attributes {dimension_semantics = [#tpu.dimension_semantics<parallel>], iteration_bounds = array<i64: 2>, scalar_prefetch = 0 : i64, scratch_operands = 0 : i64, tpu.core_type = #tpu.core_type<tc>, window_params = [{transform_indices = @transform_0, window_bounds = array<i64: 8, 128>}, {pipeline_mode = #tpu.pipeline_mode<synchronous>, transform_indices = @transform_1, window_bounds = array<i64: 128, 128>}, {pipeline_mode = #tpu.pipeline_mode<synchronous>, transform_indices = @transform_2, window_bounds = array<i64: 128, 128>}, {transform_indices = @transform_3, window_bounds = array<i64: 8, 128>}]} {
    %c0 = arith.constant 0 : index
    %c0_0 = arith.constant 0 : index
    %0 = vector.load %arg1[%c0, %c0_0] : memref<8x128xbf16, #tpu.memory_space<vmem>>, vector<8x128xbf16>
    %1 = arith.extf %0 : vector<8x128xbf16> to vector<8x128xf32>
    %2 = arith.mulf %1, %1 : vector<8x128xf32>
    %c0_1 = arith.constant 0 : index
    %c0_2 = arith.constant 0 : index
    %3 = vector.load %arg2[%c0_1, %c0_2] : memref<128x128xf32, #tpu.memory_space<vmem>>, vector<128x128xf32>
    %cst = arith.constant dense<0.000000e+00> : vector<8x128xf32>
    %4 = tpu.matmul %2, %3, %cst {dimension_numbers = #tpu.dot_dimension_numbers<[1], [0], [0], [1], [0, 0, 1, 1], [], []>} : vector<8x128xf32>, vector<128x128xf32>, vector<8x128xf32> -> vector<8x128xf32>
    %cst_3 = arith.constant 1.000000e-24 : f32
    %5 = vector.broadcast %cst_3 : f32 to vector<8x128xf32>
    %6 = arith.maximumf %4, %5 : vector<8x128xf32>
    %7 = math.rsqrt %6 : vector<8x128xf32>
    %c0_4 = arith.constant 0 : index
    %c0_5 = arith.constant 0 : index
    %8 = vector.load %arg3[%c0_4, %c0_5] : memref<128x128xf32, #tpu.memory_space<vmem>>, vector<128x128xf32>
    %cst_6 = arith.constant dense<0.000000e+00> : vector<8x128xf32>
    %9 = tpu.matmul %7, %8, %cst_6 {dimension_numbers = #tpu.dot_dimension_numbers<[1], [0], [0], [1], [0, 0, 1, 1], [], []>} : vector<8x128xf32>, vector<128x128xf32>, vector<8x128xf32> -> vector<8x128xf32>
    %10 = arith.mulf %1, %9 : vector<8x128xf32>
    %11 = arith.truncf %10 : vector<8x128xf32> to vector<8x128xbf16>
    %c0_7 = arith.constant 0 : index
    %c0_8 = arith.constant 0 : index
    %12 = vector.load %arg4[%c0_7, %c0_8] : memref<8x128xbf16, #tpu.memory_space<vmem>>, vector<8x128xbf16>
    tpu.vector_store %arg4[%c0_7, %c0_8], %11 {strides = array<i32>} : memref<8x128xbf16, #tpu.memory_space<vmem>>, vector<8x128xbf16>,
    return
  }
  func.func @transform_0(%arg0: i32) -> (i32, i32) {
    %c0_i32 = arith.constant 0 : i32
    %c0_i32_0 = arith.constant 0 : i32
    return %arg0, %c0_i32 : i32, i32
  }
  func.func @transform_1(%arg0: i32) -> (i32, i32) {
    %c0_i32 = arith.constant 0 : i32
    %c0_i32_0 = arith.constant 0 : i32
    %c0_i32_1 = arith.constant 0 : i32
    return %c0_i32, %c0_i32_0 : i32, i32
  }
  func.func @transform_2(%arg0: i32) -> (i32, i32) {
    %c0_i32 = arith.constant 0 : i32
    %c0_i32_0 = arith.constant 0 : i32
    %c0_i32_1 = arith.constant 0 : i32
    return %c0_i32, %c0_i32_0 : i32, i32
  }
  func.func @transform_3(%arg0: i32) -> (i32, i32) {
    %c0_i32 = arith.constant 0 : i32
    %c0_i32_0 = arith.constant 0 : i32
    return %arg0, %c0_i32 : i32, i32
  }
}

</mosaic_0001>

<bundles_post_ra>
// kernel: tpu_custom_call.1
= control target key start
LH: loop header
LB: loop body
LE: loop exit
PB: predicated region body
PF: predicated region fallthrough
CT: control target
= control target key end

     0   :  { %8 = vsyncpa [#allocation3], 0  ;;  %s1179_s0 = inlined_call_operand.hbm [shape: bf16[16,128], index: 0, kind: input, shape index: {}]   ;;  %s1180_s1 = inlined_call_operand.hbm [shape: f32[128,128], index: 1, kind: input, shape index: {}]   ;;  %s1181_s2 = inlined_call_operand.hbm [shape: f32[128,128], index: 2, kind: input, shape index: {}]   ;;  %s1182_s3 = inlined_call_operand.hbm [shape: bf16[16,128], index: 3, kind: output, shape index: {}]  }
   0x1   :  { %10 = vsyncpa [#allocation3 + $0x1], 0 }
   0x2   :  { %11 = vsyncpa [#allocation6], 0 }
   0x3   :  { %12 = vsyncpa [#allocation4], 0 }
   0x4   :  { %14 = vsyncpa [#allocation4 + $0x1], 0  ;;  %s927_s12 = smov 0   ;;  %s929_s13 = smov 0  }
   0x5   :  { %s931_s14 = smov 0   ;;  %s933_s15 = smov 0  }
   0x6 LB: > { %s948_s16 = sadd.s32 4294967295, %s896_s15   ;;  %s498_s17 = sadd.s32 4294967294, %s896_s15   ;;  %s896_s15 = sphi %s933_s15, %s1202_s15   ;;  %s892_s14 = sphi %s931_s14, %s1201_s14   ;;  %s888_s13 = sphi %s929_s13, %s1200_s13   ;;  %s884_s12 = sphi %s927_s12, %s1199_s12  }
   0x7   : > { %p40_p0 = scmp.ne.s32.totalorder %s888_s13, %s884_s12  ;;  %p1183_p1 = scmp.eq.s32.totalorder %s948_s16, 0 }
   0x8   : > { %p112_p3 = scmp.eq.s32.totalorder %s498_s17, 1  ;;  %p499_p5 = scmp.ge.s32.totalorder %s896_s15, 1 }
   0x9   : > { %p957_p4 = por %p1183_p1, %p40_p0  ;;  %p119_p7 = scmp.lt.s32.totalorder %s896_s15, 3 }
   0xa   : > { %p962_p6 = por %p112_p3, %p40_p0  ;;  %s898_s21 = smov [#allocation5]  }
   0xb   : > { %s1186_s18 = scalar_select %p957_p4, 1, 0 }
   0xc   : > { %s1187_s19 = scalar_select %p962_p6, 1, 0 }
   0xd   : > { %p967_p8 = pnand %p499_p5, %p119_p7  ;;  %s131_s22 = sshll.u32 %s898_s21, 4  ;;  %s971_s22 = int_to_ptr.vmem [resolvable:$true] %s131_s22 }
   0xe   : > { %s899_s24 = smov [#allocation7]   ;;  %s740_s28 = scalar_lea.hbm %s1180_s1, 2048 }
   0xf   : > { %p678_p9 = pneg %p967_p8  ;;  %s144_s25 = sshll.u32 %s899_s24, 4  ;;  %s982_s25 = int_to_ptr.vmem [resolvable:$true] %s144_s25 }
  0x10   : > { %p741_p12 = scmp.ne.s32.totalorder %s1180_s1, %s740_s28  ;;  %p747_p5 = scmp.lt.u32.totalorder %s740_s28, %s1180_s1 }
  0x11   : > { %p978_p11 = pnand %p678_p9, %p1183_p1 }
  0x13   : > { %p742_p13 = pneg %p978_p11 }
  0x15   : > { %p743_p0 = pnand %p742_p13, %p741_p12 }
  0x17   : > { %p744_p3 = pneg %p743_p0 }
  0x19   : > { %p749_p7 = pnand %p747_p5, %p744_p3 }
  0x1b   : > { %752 = shalt.err (!%p749_p7)
}
  0x1c   : > { %s753_s6 = scalar_lea.vmem %s971_s22, 2048  ;;  %p761_p2 = scmp.lt.s32.totalorder %s971_s22, %s971_s22 }
  0x1d   : > { %p754_p9 = scmp.ne.s32.totalorder %s971_s22, %s753_s6  ;;  %p762_p12 = scmp.lt.s32.totalorder %s753_s6, %s753_s6 }
  0x1f   : > { %p756_p10 = pnand %p754_p9, %p742_p13  ;;  %p763_p0 = por %p762_p12, %p761_p2 }
  0x21   : > { %p757_p1 = pneg %p756_p10 }
  0x23   : > { %p764_p6 = pnand %p763_p0, %p757_p1 }
  0x25   : > { %767 = shalt.err (!%p764_p6)
}
  0x26   : > { %s900_s7 = smov 128   ;;  %s901_s8 = smov 8  }
  0x27   : > { %681 = dma.hbm_to_vmem [thread:$0]  (!%p978_p11), %s1180_s1, 2048, %s971_s22, [#allocation6], %s900_s7, %s900_s7, %s901_s8  }
  0x28   : > { %s768_s21 = scalar_lea.hbm %s1181_s2, 2048 }
  0x29   : > { %p769_p2 = scmp.ne.s32.totalorder %s1181_s2, %s768_s21  ;;  %p775_p10 = scmp.lt.u32.totalorder %s768_s21, %s1181_s2 }
  0x2b   : > { %p771_p1 = pnand %p769_p2, %p742_p13 }
  0x2d   : > { %p772_p6 = pneg %p771_p1 }
  0x2f   : > { %p777_p3 = pnand %p775_p10, %p772_p6 }
  0x31   : > { %780 = shalt.err (!%p777_p3)
}
  0x32   : > { %s781_s22 = scalar_lea.vmem %s982_s25, 2048  ;;  %p789_p12 = scmp.lt.s32.totalorder %s982_s25, %s982_s25 }
  0x33   : > { %p782_p5 = scmp.ne.s32.totalorder %s982_s25, %s781_s22  ;;  %p790_p0 = scmp.lt.s32.totalorder %s781_s22, %s781_s22 }
  0x35   : > { %p784_p7 = pnand %p782_p5, %p742_p13  ;;  %p791_p2 = por %p790_p0, %p789_p12 }
  0x37   : > { %p785_p9 = pneg %p784_p7 }
  0x39   : > { %p792_p1 = pnand %p791_p2, %p785_p9 }
  0x3b   : > { %795 = shalt.err (!%p792_p1)
}
  0x3c   : > { %684 = dma.hbm_to_vmem [thread:$0]  (!%p978_p11), %s1181_s2, 2048, %s982_s25, [#allocation6], %s900_s7, %s900_s7, %s901_s8  }
  0x3d   : > { %s1037_s4 = sadd.s32 1, %s896_s15   ;;  %s27_s23 = sadd.s32 1, %s892_s14 }
  0x3e   : > { %s24_s5 = ssub.s32 %s896_s15, %s1037_s4  ;;  %p34_p13 = scmp.ne.s32.totalorder %s892_s14, %s888_s13 }
  0x3f   : > { %p25_p6 = scmp.eq.s32.totalorder %s24_s5, 0  ;;  %p35_p10 = scmp.eq.s32.totalorder %s896_s15, 0 }
  0x40   : > { %p1190_p3 = scmp.eq.s32.totalorder %s948_s16, 1  ;;  %p695_p7 = scmp.lt.s32.totalorder %s896_s15, 2 }
  0x41   : > { %s1053_s9 = scalar_select %p25_p6, %s892_s14, %s27_s23  }
  0x42   : > { %p1047_p5 = por %p1190_p3, %p34_p13  ;;  %p36_p9 = por %p35_p10, %p34_p13 }
  0x43   : > { %s158_s10 = sand.u32 1, %s892_s14   ;;  %s504_s25 = sshll.u32 %s896_s15, 6 }
  0x44   : > { %s1191_s6 = scalar_select %p1047_p5, 1, 0 }
  0x45   : > { %s503_s11 = sshll.u32 %s158_s10, 2  ;;  %s1060_s17 = scalar_lea.hbm %s1179_s0, %s504_s25 }
  0x46   : > { %s162_s21 = scalar_lea.vmem [#allocation2], %s503_s11  ;;  %p1064_p11 = pnand %p695_p7, %p36_p9 }
  0x47   : > { %s169_s24 = sshll.u32 %s162_s21, 4  ;;  %s159_s27 = scalar_lea.sflag [#allocation3], %s158_s10  ;;  %s1062_s24 = int_to_ptr.vmem [resolvable:$true] %s169_s24 }
  0x48   : > { %s796_s28 = scalar_lea.hbm %s1060_s17, 64  ;;  %p798_p0 = pneg %p1064_p11 }
  0x49   : > { %p797_p12 = scmp.ne.s32.totalorder %s1060_s17, %s796_s28  ;;  %s801_s30 = scalar_lea.hbm %s1179_s0, 128 }
  0x4a   : > { %p802_p13 = scmp.lt.u32.totalorder %s1060_s17, %s1179_s0  ;;  %p803_p6 = scmp.lt.u32.totalorder %s801_s30, %s796_s28 }
  0x4b   : > { %p799_p2 = pnand %p798_p0, %p797_p12  ;;  %p805_p3 = scmp.lt.u32.totalorder %s796_s28, %s1060_s17 }
  0x4c   : > { %p804_p10 = por %p803_p6, %p802_p13 }
  0x4d   : > { %p800_p1 = pneg %p799_p2 }
  0x4e   : > { %p806_p7 = por %p805_p3, %p804_p10 }
  0x50   : > { %p807_p9 = pnand %p806_p7, %p800_p1 }
  0x52   : > { %810 = shalt.err (!%p807_p9)
}
  0x53   : > { %s811_s10 = scalar_lea.vmem %s1062_s24, 64  ;;  %s902_s11 = smov [#allocation2]  }
  0x54   : > { %p812_p12 = scmp.ne.s32.totalorder %s1062_s24, %s811_s10  ;;  %s816_s25 = sshll.u32 %s902_s11, 4  ;;  %s817_s25 = int_to_ptr.vmem [resolvable:$false] %s816_s25 }
  0x55   : > { %s818_s7 = scalar_lea.vmem %s817_s25, 128  ;;  %p819_p4 = scmp.lt.s32.totalorder %s1062_s24, %s817_s25 }
  0x56   : > { %p814_p2 = pnand %p812_p12, %p798_p0  ;;  %p820_p13 = scmp.lt.s32.totalorder %s818_s7, %s811_s10 }
  0x58   : > { %p815_p5 = pneg %p814_p2  ;;  %p821_p6 = por %p820_p13, %p819_p4 }
  0x5a   : > { %p822_p10 = pnand %p821_p6, %p815_p5 }
  0x5c   : > { %825 = shalt.err (!%p822_p10)
}
  0x5d   : > { %688 = dma.hbm_to_vmem [thread:$0]  (!%p1064_p11), %s1060_s17, 64, %s1062_s24, %s159_s27  }
  0x5e   : > { %178 = sbr.rel (%p967_p8) target bundleno = 594 (0x252), region = 32  ;;  %s1096_s8 = sand.u32 (!%p967_p8), 1, %s888_s13  }
  0x5f   : > { %s506_s21 = sshll.u32 (!%p967_p8), %s1096_s8, 2  ;;  %s181_s28 = scalar_lea.sflag (!%p967_p8), [#allocation3], %s1096_s8 }
  0x60   : > { %s1102_s22 = scalar_lea.vmem (!%p967_p8), [#allocation2], %s506_s21  ;;  %p1193_p4 = scmp.ne.s32.totalorder (!%p967_p8), %s1186_s18, 0 }
  0x65   : > { %871 = dma.done.wait (%p1193_p4), %s181_s28, 64  }
  0x66   : > { %873 = vsyncadd (%p1193_p4), %s181_s28, 4294967232  ;;  %p1194_p5 = scmp.eq.s32.totalorder %s948_s16, 0 }
  0x68   : > { %875 = dma.done.wait (%p1194_p5), [#allocation6], 4096   ;;  %p1195_p8 = pmov %p1194_p5 }
  0x69   : > { %v903_v0 = vmov 0.0|0.0   ;;  %vm904_vm0 = vmmov 0   ;;  %v905_v1 = vmov 0.0   ;;  %v218_v2 = vld [vmem:[#allocation5] sm:$0xff]  ;;  %v219_v3 = vld [vmem:[#allocation5 + $0x8] sm:$0xff]  ;;  %v220_v4 = vld [vmem:[#allocation5 + $0x10] sm:$0xff] }
  0x6a   : > { %877 = vsyncadd (%p1195_p8), [#allocation6], 4294963200  ;;  %618 = vmatprep.subr.bf16.mxu0 %v903_v0  ;;  %580 = vmatprep.mubr.msk.f32.mxu0 %vm904_vm0, %v905_v1  ;;  %v619_v5 = vpack.c.bf16 %v219_v3, %v218_v2  ;;  %v221_v6 = vld [vmem:[#allocation5 + $0x18] sm:$0xff]  ;;  %v222_v8 = vld [vmem:[#allocation5 + $0x20] sm:$0xff]  ;;  %s511_s18 = sshll.u32 %s948_s16, 6  ;;  %s214_s20 = scalar_lea.vmem [#allocation8], %s506_s21 }
  0x6b   : > { %642 = vmatprep.subr.bf16.mxu1 %v903_v0  ;;  %615 = vmatprep.mubr.msk.f32.mxu1 %vm904_vm0, %v905_v1  ;;  %v622_v7 = vpack.c.bf16 %v221_v6, %v220_v4  ;;  %v223_v9 = vld [vmem:[#allocation5 + $0x28] sm:$0xff]  ;;  %v306_v10 = vld [vmem:[#allocation7] sm:$0xff]  ;;  %v308_v12 = vld [vmem:[#allocation7 + $0x10] sm:$0xff]  ;;  %s409_s17 = sshll.u32 %s214_s20, 4  ;;  %s1135_s27 = scalar_lea.hbm %s1182_s3, %s511_s18  ;;  %s1137_s17 = int_to_ptr.vmem [resolvable:$true] %s409_s17 }
  0x6c   : > { %620 = vmatpush3.bf16.msra.mxu0 %v619_v5  ;;  %v307_v11 = vld [vmem:[#allocation7 + $0x8] sm:$0xff]  ;;  %v309_v13 = vld [vmem:[#allocation7 + $0x18] sm:$0xff]  ;;  %v625_v14 = vpack.c.bf16 %v223_v9, %v222_v8  ;;  %v224_v16 = vld [vmem:[#allocation5 + $0x30] sm:$0xff]  ;;  %s396_s29 = scalar_lea.sflag [#allocation4], %s1096_s8  ;;  %s826_s30 = scalar_lea.vmem %s1137_s17, 64 }
  0x6d   : > { %621 = vmatprep.subr.bf16.mxu0 %v903_v0  ;;  %v643_v15 = vpack.c.bf16 %v307_v11, %v306_v10  ;;  %v225_v17 = vld [vmem:[#allocation5 + $0x38] sm:$0xff]  ;;  %v646_v18 = vpack.c.bf16 %v309_v13, %v308_v12  ;;  %v310_v19 = vld [vmem:[#allocation7 + $0x20] sm:$0xff]  ;;  %v311_v20 = vld [vmem:[#allocation7 + $0x28] sm:$0xff]  ;;  %p827_p11 = scmp.ne.s32.totalorder %s1137_s17, %s826_s30  ;;  %p1196_p0 = scmp.ne.s32.totalorder %s1191_s6, 0 }
  0x6e   : > { %v628_v21 = vpack.c.bf16 %v225_v17, %v224_v16  ;;  %v226_v22 = vld [vmem:[#allocation5 + $0x40] sm:$0xff]  ;;  %v227_v23 = vld [vmem:[#allocation5 + $0x48] sm:$0xff]  ;;  %v649_v24 = vpack.c.bf16 %v311_v20, %v310_v19  ;;  %v312_v25 = vld [vmem:[#allocation7 + $0x30] sm:$0xff]  ;;  %s906_s16 = smov [#allocation8]  }
  0x6f   : > { %644 = vmatpush3.bf16.msra.mxu1 %v643_v15  ;;  %v313_v26 = vld [vmem:[#allocation7 + $0x38] sm:$0xff]  ;;  %v631_v27 = vpack.c.bf16 %v227_v23, %v226_v22  ;;  %v228_v28 = vld [vmem:[#allocation5 + $0x50] sm:$0xff]  ;;  %v314_v31 = vld [vmem:[#allocation7 + $0x40] sm:$0xff]  ;;  %p828_p1 = pnand %p827_p11, %p1196_p0  ;;  %s830_s23 = sshll.u32 %s906_s16, 4  ;;  %s831_s23 = int_to_ptr.vmem [resolvable:$false] %s830_s23 }
  0x70   : > { %623 = vmatpush3.bf16.msra.mxu0 %v622_v7  ;;  %645 = vmatprep.subr.bf16.mxu1 %v903_v0  ;;  %v229_v29 = vld [vmem:[#allocation5 + $0x58] sm:$0xff]  ;;  %v652_v30 = vpack.c.bf16 %v313_v26, %v312_v25  ;;  %v315_v32 = vld [vmem:[#allocation7 + $0x48] sm:$0xff]  ;;  %v230_v34 = vld [vmem:[#allocation5 + $0x60] sm:$0xff]  ;;  %s832_s5 = scalar_lea.vmem %s831_s23, 128  ;;  %p833_p7 = scmp.lt.s32.totalorder %s1137_s17, %s831_s23 }
  0x71   : > { %624 = vmatprep.subr.bf16.mxu0 %v903_v0  ;;  %v634_v33 = vpack.c.bf16 %v229_v29, %v228_v28  ;;  %v231_v35 = vld [vmem:[#allocation5 + $0x68] sm:$0xff]  ;;  %v655_v36 = vpack.c.bf16 %v315_v32, %v314_v31  ;;  %v215_v38 = vld [vmem:[%s1102_s22] sm:$0xf]  ;;  %v232_v39 = vld [vmem:[#allocation5 + $0x70] sm:$0xff]  ;;  %p829_p3 = pneg %p828_p1  ;;  %p834_p9 = scmp.lt.s32.totalorder %s832_s5, %s826_s30 }
  0x72   : > { %v637_v37 = vpack.c.bf16 %v231_v35, %v230_v34  ;;  %v233_v40 = vld [vmem:[#allocation5 + $0x78] sm:$0xff]  ;;  %v216_v41 = vunpack.c.l.bf16 %v215_v38  ;;  %v316_v44 = vld [vmem:[#allocation7 + $0x50] sm:$0xff]  ;;  %v318_v47 = vld [vmem:[#allocation7 + $0x60] sm:$0xff] }
  0x73   : > { %647 = vmatpush3.bf16.msra.mxu1 %v646_v18  ;;  %v640_v42 = vpack.c.bf16 %v233_v40, %v232_v39  ;;  %v317_v45 = vld [vmem:[#allocation7 + $0x58] sm:$0xff]  ;;  %v319_v48 = vld [vmem:[#allocation7 + $0x68] sm:$0xff]  ;;  %v320_v50 = vld [vmem:[#allocation7 + $0x70] sm:$0xff]  ;;  %p835_p12 = por %p834_p9, %p833_p7 }
  0x74   : > { %626 = vmatpush3.bf16.msra.mxu0 %v625_v14  ;;  %648 = vmatprep.subr.bf16.mxu1 %v903_v0  ;;  %v217_v43 = vmul.f32 %v216_v41, %v216_v41  ;;  %v658_v46 = vpack.c.bf16 %v317_v45, %v316_v44  ;;  %v661_v49 = vpack.c.bf16 %v319_v48, %v318_v47  ;;  %v321_v51 = vld [vmem:[#allocation7 + $0x78] sm:$0xff] }
  0x75   : > { %627 = vmatprep.subr.bf16.mxu0 %v903_v0  ;;  %v664_v52 = vpack.c.bf16 %v321_v51, %v320_v50  ;;  %p836_p2 = pnand %p835_p12, %p829_p3 }
  0x77   : > { %650 = vmatpush3.bf16.msra.mxu1 %v649_v24 }
  0x78   : > { %629 = vmatpush3.bf16.msra.mxu0 %v628_v21  ;;  %651 = vmatprep.subr.bf16.mxu1 %v903_v0 }
  0x79   : > { %630 = vmatprep.subr.bf16.mxu0 %v903_v0 }
  0x7b   : > { %653 = vmatpush3.bf16.msra.mxu1 %v652_v30 }
  0x7c   : > { %632 = vmatpush3.bf16.msra.mxu0 %v631_v27  ;;  %654 = vmatprep.subr.bf16.mxu1 %v903_v0 }
  0x7d   : > { %633 = vmatprep.subr.bf16.mxu0 %v903_v0 }
  0x7f   : > { %656 = vmatpush3.bf16.msra.mxu1 %v655_v36 }
  0x80   : > { %635 = vmatpush3.bf16.msra.mxu0 %v634_v33  ;;  %657 = vmatprep.subr.bf16.mxu1 %v903_v0 }
  0x81   : > { %636 = vmatprep.subr.bf16.mxu0 %v903_v0 }
  0x83   : > { %659 = vmatpush3.bf16.msra.mxu1 %v658_v46 }
  0x84   : > { %638 = vmatpush3.bf16.msra.mxu0 %v637_v37  ;;  %660 = vmatprep.subr.bf16.mxu1 %v903_v0 }
  0x85   : > { %639 = vmatprep.subr.bf16.mxu0 %v903_v0 }
  0x87   : > { %662 = vmatpush3.bf16.msra.mxu1 %v661_v49 }
  0x88   : > { %641 = vmatpush3.bf16.msra.mxu0 %v640_v42  ;;  %663 = vmatprep.subr.bf16.mxu1 %v903_v0 }
  0x8b   : > { %581 = vmatmul.mubr.f32.vlgmr.msra.gmra.mrb[0].mxu0 %v217_v43  ;;  %665 = vmatpush3.bf16.msra.mxu1 %v664_v52 }
 0x15e   : > { %v300_v53 = vpop.f32.mrb[0].mxu0 }
 0x15f   : > { %v304_v54 = vmax.f32 %v300_v53, 1e-24  ;;  %v582_v55 = vpop.f32.mrb[1].mxu0 }
 0x161   : > { %738 = vrsqrt.f32 %v304_v54 }
 0x16b   : > { %v739_v56 = vpop.eup %738 }
 0x16c   : > { %616 = vmatmul.mubr.f32.vlgmr.msra.gmra.mrb[0].mxu1 %v739_v56 }
 0x23f   : > { %v388_v57 = vpop.f32.mrb[0].mxu1 }
 0x240   : > { %v392_v58 = vmul.f32 %v388_v57, %v216_v41  ;;  %v617_v59 = vpop.f32.mrb[1].mxu1 }
 0x242   : > { %v393_v60 = vpack.c.bf16 %v392_v58, %v392_v58 }
 0x244   : > { %394 = vst [vmem:[%s214_s20] sm:$0xf] %v393_v60 }
 0x245   : > { %839 = shalt.err (!%p836_p2)
}
 0x246   : > { %s840_s10 = scalar_lea.hbm %s1135_s27, 64  ;;  %s844_s7 = scalar_lea.hbm %s1182_s3, 128 }
 0x247   : > { %p841_p13 = scmp.ne.s32.totalorder %s1135_s27, %s840_s10  ;;  %p845_p4 = scmp.lt.u32.totalorder %s1135_s27, %s1182_s3 }
 0x248   : > { %p846_p5 = scmp.lt.u32.totalorder %s844_s7, %s840_s10  ;;  %p848_p11 = scmp.lt.u32.totalorder %s840_s10, %s1135_s27 }
 0x249   : > { %p842_p6 = pnand %p841_p13, %p1196_p0 }
 0x24a   : > { %p847_p8 = por %p846_p5, %p845_p4 }
 0x24b   : > { %p843_p10 = pneg %p842_p6 }
 0x24c   : > { %p849_p1 = por %p848_p11, %p847_p8 }
 0x24e   : > { %p850_p3 = pnand %p849_p1, %p843_p10 }
 0x250   : > { %853 = shalt.err (!%p850_p3)
}
 0x251   : > { %676 = dma.vmem_to_hbm [thread:$0]  (%p1196_p0), %s1137_s17, 64, %s1135_s27, %s396_s29  }
 0x252 PF: > { %s421_s28 = sand.u32 1, %s884_s12   ;;  %p1197_p7 = scmp.ne.s32.totalorder %s1187_s19, 0 }
 0x253   : > { %p1198_p9 = scmp.ge.s32.totalorder %s896_s15, 2  ;;  %s422_s22 = scalar_lea.sflag [#allocation4], %s421_s28 }
 0x255   : > { %p690_p12 = pnand %p1198_p9, %p1197_p7 }
 0x257   : > { %879 = dma.done.wait (!%p690_p12), %s422_s22, 64  }
 0x258   : > { %881 = vsyncadd (!%p690_p12), %s422_s22, 4294967232  ;;  %p17_p2 = scmp.ge.s32.totalorder %s1037_s4, 4   ;;  %s1199_s12 = smov %s888_s13 }
 0x259   : > { %s1200_s13 = smov %s892_s14  ;;  %s1201_s14 = smov %s1053_s9 }
 0x25a   : > { %s1202_s15 = smov %s1037_s4  ;;  %19 = sbr.rel (!%p17_p2) target bundleno = 6 (0x6), region = 85 }
 0x261   :  { %427 = vsyncpa [#allocation3], 1 }
 0x262   :  { %429 = vsyncpa [#allocation3 + $0x1], 1 }
 0x263   :  { %430 = vsyncpa [#allocation6], 1 }
 0x264   :  { %431 = vsyncpa [#allocation4], 1 }
 0x265   :  { %433 = vsyncpa [#allocation4 + $0x1], 1 }

</bundles_post_ra>
